<compile_context>
chip_gen: v5e
topology: v5e:2x2
jax: 0.10.0
libtpu: 0.0.40
codegen_flags: <defaults>
</compile_context>

<pallas_src>
import functools

import jax
import jax.numpy as jnp
from jax import lax
from jax.experimental import pallas as pl
from jax.experimental.pallas import tpu as pltpu

_MASK_VALUE = -1e30                     # large-finite, NaN-safe mask value
_VMEM_LIMIT = 48 * 1024 * 1024          # explicit budget; fits v7x 64 MiB VMEM


def _cdiv(a, b):
    return (a + b - 1) // b


# ---------------------------------------------------------------------------
# Stage 1: fused Q/K/V projection — one (tm, C) @ (C, 3C) GEMM per row tile.
# ---------------------------------------------------------------------------
def _qkv_proj_kernel(x_ref, w_ref, q_ref, k_ref, v_ref):
    x = x_ref[...]                                             # (tm, C)
    qkv = jnp.dot(x, w_ref[...], preferred_element_type=jnp.float32)  # (tm, 3C)
    c = q_ref.shape[-1]
    # 1/sqrt(C) scale was folded into the q columns of the weight already.
    q_ref[...] = qkv[:, :c].astype(q_ref.dtype)
    k_ref[...] = qkv[:, c:2 * c].astype(k_ref.dtype)
    v_ref[...] = qkv[:, 2 * c:].astype(v_ref.dtype)


def _qkv_projection(x2d, w_qkv, *, out_dtype, block_m):
    M, C = x2d.shape
    tm = M if M <= block_m else block_m
    row_spec = pl.BlockSpec((tm, C), lambda i: (i, 0))
    w_spec = pl.BlockSpec((C, 3 * C), lambda i: (0, 0))        # resident weights
    out_sds = jax.ShapeDtypeStruct((M, C), out_dtype)
    return pl.pallas_call(
        _qkv_proj_kernel,
        out_shape=(out_sds, out_sds, out_sds),
        grid_spec=pltpu.PrefetchScalarGridSpec(
            num_scalar_prefetch=0,
            grid=(_cdiv(M, tm),),
            in_specs=[row_spec, w_spec],
            out_specs=(row_spec, row_spec, row_spec),
        ),
        compiler_params=pltpu.CompilerParams(
            dimension_semantics=("parallel",),
            vmem_limit_bytes=_VMEM_LIMIT),
    )(x2d, w_qkv)


# ---------------------------------------------------------------------------
# Stage 2: flash-style causal attention over a precomputed lower-triangular
# (qi, ki) block schedule (no wasted grid steps, no wasted K/V DMAs).
# ---------------------------------------------------------------------------
def _flash_attn_kernel(qi_ref, ki_ref, mask_ref, last_ref,
                       q_ref, k_ref, v_ref, o_ref,
                       m_sc, l_sc, acc_sc,
                       *, tq, tkv, seq_len, guard_pad, approx_recip):
    step = pl.program_id(1)
    ki = ki_ref[step]

    @pl.when(ki == 0)                       # first kv block of this q row
    def _init():
        m_sc[...] = jnp.full(m_sc.shape, -jnp.inf, m_sc.dtype)
        l_sc[...] = jnp.zeros(l_sc.shape, l_sc.dtype)
        acc_sc[...] = jnp.zeros(acc_sc.shape, acc_sc.dtype)

    def _block(apply_mask):
        q = q_ref[...]                                          # (tq, C), pre-scaled
        k = k_ref[...]                                          # (tkv, C)
        v = v_ref[...]                                          # (tkv, C)
        # q @ k^T as a contraction on dim 1 of both operands — no transpose.
        s = lax.dot_general(q, k, (((1,), (1,)), ((), ())),
                            preferred_element_type=jnp.float32)  # (tq, tkv)
        if apply_mask:                      # only on diagonal / padded blocks
            qi = qi_ref[step]
            row = qi * tq + lax.broadcasted_iota(jnp.int32, (tq, tkv), 0)
            col = ki * tkv + lax.broadcasted_iota(jnp.int32, (tq, tkv), 1)
            keep = row >= col
            if guard_pad:                   # static: only when T % tkv != 0
                keep = keep & (col < seq_len)
                valid_kv = (ki * tkv +
                            lax.broadcasted_iota(jnp.int32, (tkv, 1), 0)) < seq_len
                v = jnp.where(valid_kv, v, jnp.array(0, v.dtype))
            s = jnp.where(keep, s, _MASK_VALUE)

        m_prev = m_sc[...]
        m_new = jnp.maximum(m_prev, jnp.max(s, axis=-1, keepdims=True))
        alpha = jnp.exp(m_prev - m_new)
        p = jnp.exp(s - m_new)
        l_sc[...] = alpha * l_sc[...] + jnp.sum(p, axis=-1, keepdims=True)
        acc_sc[...] = alpha * acc_sc[...] + jnp.dot(
            p.astype(v.dtype), v, preferred_element_type=jnp.float32)
        m_sc[...] = m_new

    needs_mask = mask_ref[step] != 0

    @pl.when(needs_mask)
    def _masked():
        _block(True)

    @pl.when(jnp.logical_not(needs_mask))
    def _unmasked():
        _block(False)

    @pl.when(last_ref[step] != 0)           # last kv block of this q row
    def _finalize():
        inv_l = pl.reciprocal(l_sc[...], approx=approx_recip)   # EUP slot
        o_ref[...] = (acc_sc[...] * inv_l).astype(o_ref.dtype)


def _build_schedule(T, tq, tkv):
    """Lower-triangular (qi, ki) block list + per-step mask/finalize flags."""
    nq, nkv = _cdiv(T, tq), _cdiv(T, tkv)
    qi_l, ki_l, mask_l, last_l = [], [], [], []
    for qi in range(nq):
        last_ki = min((qi * tq + tq - 1) // tkv, nkv - 1)
        for ki in range(last_ki + 1):
            fully_below = (ki * tkv + tkv - 1) <= qi * tq
            qi_l.append(qi)
            ki_l.append(ki)
            mask_l.append(0 if fully_below else 1)
            last_l.append(1 if ki == last_ki else 0)
    as_i32 = lambda lst: jnp.asarray(lst, dtype=jnp.int32)
    return as_i32(qi_l), as_i32(ki_l), as_i32(mask_l), as_i32(last_l)


# ---------------------------------------------------------------------------
# Public wrapper: matches PyTorch Head.forward semantics.
# ---------------------------------------------------------------------------
def head_forward(x, wk, wq, wv, *, compute_dtype=jnp.bfloat16,
                 block_m=512, block_q=256, block_kv=256):
    """x: (B, T, C); wk/wq/wv: (C, C) PyTorch (out_features, in_features)."""
    B, T, C = x.shape
    out_dtype = x.dtype
    cdt = jnp.dtype(compute_dtype)
    scale = float(C) ** -0.5

    # One-time layout work outside the kernels: transpose weights, fold the
    # attention scale into W_q, fuse into a single (C, 3C) GEMM operand.
    w_qkv = jnp.concatenate([wq.T * scale, wk.T, wv.T], axis=1).astype(cdt)
    x2d = x.reshape(B * T, C).astype(cdt)

    q2d, k2d, v2d = _qkv_projection(x2d, w_qkv, out_dtype=cdt, block_m=block_m)
    q3 = q2d.reshape(B, T, C)
    k3 = k2d.reshape(B, T, C)
    v3 = v2d.reshape(B, T, C)

    tq = T if T <= block_q else block_q
    tkv = T if T <= block_kv else block_kv

    qi_ids, ki_ids, mask_flags, last_flags = _build_schedule(T, tq, tkv)
    n_steps = int(qi_ids.shape[0])
    guard_pad = (T % tkv) != 0

    kernel = functools.partial(
        _flash_attn_kernel, tq=tq, tkv=tkv, seq_len=T, guard_pad=guard_pad,
        approx_recip=(cdt != jnp.dtype(jnp.float32)))

    q_spec = pl.BlockSpec((pl.Squeezed(), tq, C),
                          lambda b, s, qi, ki, mf, lf: (b, qi[s], 0))
    kv_spec = pl.BlockSpec((pl.Squeezed(), tkv, C),
                           lambda b, s, qi, ki, mf, lf: (b, ki[s], 0))
    out_spec = pl.BlockSpec((pl.Squeezed(), tq, C),
                            lambda b, s, qi, ki, mf, lf: (b, qi[s], 0))

    return pl.pallas_call(
        kernel,
        out_shape=jax.ShapeDtypeStruct((B, T, C), out_dtype),
        grid_spec=pltpu.PrefetchScalarGridSpec(
            num_scalar_prefetch=4,
            grid=(B, n_steps),
            in_specs=[q_spec, kv_spec, kv_spec],
            out_specs=out_spec,
            scratch_shapes=[
                pltpu.VMEM((tq, 1), jnp.float32),   # running max m
                pltpu.VMEM((tq, 1), jnp.float32),   # running sum l
                pltpu.VMEM((tq, C), jnp.float32),   # output accumulator
            ],
        ),
        compiler_params=pltpu.CompilerParams(
            dimension_semantics=("parallel", "arbitrary"),
            vmem_limit_bytes=_VMEM_LIMIT),
    )(qi_ids, ki_ids, mask_flags, last_flags, q3, k3, v3)


def head_reference(x, wk, wq, wv):
    """Pure-JAX reference matching the PyTorch forward (full-f32 matmuls)."""
    B, T, C = x.shape
    with jax.default_matmul_precision("float32"):
        k = x @ wk.T
        q = x @ wq.T
        v = x @ wv.T
        wei = (q @ jnp.swapaxes(k, -2, -1)) * (C ** -0.5)
        tril = jnp.tril(jnp.ones((T, T)))
        wei = jnp.where(tril == 0, -jnp.inf, wei)
        wei = jax.nn.softmax(wei, axis=-1)
        return wei @ v


if __name__ == "__main__":
    key = jax.random.PRNGKey(0)
    kx, kk, kq, kv_ = jax.random.split(key, 4)

    B, T, C = 2, 8, 32
    x = jax.random.normal(kx, (B, T, C), dtype=jnp.float32)
    # PyTorch-style (out_features, in_features) Linear weights.
    wscale = 1.0 / (C ** 0.5)
    wk = jax.random.uniform(kk, (C, C), jnp.float32, -wscale, wscale)
    wq = jax.random.uniform(kq, (C, C), jnp.float32, -wscale, wscale)
    wv = jax.random.uniform(kv_, (C, C), jnp.float32, -wscale, wscale)

    ref = head_reference(x, wk, wq, wv)

    # f32 matmul-operand verification path (exact reciprocal).
    out_f32 = head_forward(x, wk, wq, wv, compute_dtype=jnp.float32)
    jax.block_until_ready(out_f32)
    assert out_f32.shape == (B, T, C)
    assert jnp.allclose(out_f32, ref, atol=1e-2, rtol=1e-2), "f32 mismatch vs reference"

    # Default bf16 matmul-operand / bf16 intermediate path (MXU fast path).
    out_bf16 = head_forward(x, wk, wq, wv)
    jax.block_until_ready(out_bf16)
    assert jnp.allclose(out_bf16, ref, atol=5e-2, rtol=5e-2), "bf16 mismatch vs reference"

    # Non-divisible T with forced small tiles: exercises partial blocks, the
    # diagonal-only masking path and the padded-column guard.
    T2 = 12
    x2 = jax.random.normal(kx, (B, T2, C), dtype=jnp.float32)
    ref2 = head_reference(x2, wk, wq, wv)
    out2 = head_forward(x2, wk, wq, wv, block_m=16, block_q=8, block_kv=8)
    jax.block_until_ready(out2)
    assert out2.shape == (B, T2, C)
    assert jnp.allclose(out2, ref2, atol=5e-2, rtol=5e-2), "padded-T mismatch vs reference"

    print("KERNEL_OK")
</pallas_src>

<mosaic_0001>
module attributes {stable_mosaic.version = 11 : i64} {
  func.func @_qkv_proj_kernel(%arg0: i32, %arg1: memref<16x32xf32, #tpu.memory_space<vmem>>, %arg2: memref<32x96xf32, #tpu.memory_space<vmem>>, %arg3: memref<16x32xf32, #tpu.memory_space<vmem>>, %arg4: memref<16x32xf32, #tpu.memory_space<vmem>>, %arg5: memref<16x32xf32, #tpu.memory_space<vmem>>) attributes {dimension_semantics = [#tpu.dimension_semantics<parallel>], iteration_bounds = array<i64: 1>, scalar_prefetch = 0 : i64, scratch_operands = 0 : i64, tpu.core_type = #tpu.core_type<tc>, window_params = [{transform_indices = @transform_0, window_bounds = array<i64: 16, 32>}, {pipeline_mode = #tpu.pipeline_mode<synchronous>, transform_indices = @transform_1, window_bounds = array<i64: 32, 96>}, {transform_indices = @transform_2, window_bounds = array<i64: 16, 32>}, {transform_indices = @transform_3, window_bounds = array<i64: 16, 32>}, {transform_indices = @transform_4, window_bounds = array<i64: 16, 32>}]} {
    %c0 = arith.constant 0 : index
    %c0_0 = arith.constant 0 : index
    %0 = vector.load %arg1[%c0, %c0_0] : memref<16x32xf32, #tpu.memory_space<vmem>>, vector<16x32xf32>
    %c0_1 = arith.constant 0 : index
    %c0_2 = arith.constant 0 : index
    %1 = vector.load %arg2[%c0_1, %c0_2] : memref<32x96xf32, #tpu.memory_space<vmem>>, vector<32x96xf32>
    %cst = arith.constant dense<0.000000e+00> : vector<16x96xf32>
    %2 = tpu.matmul %0, %1, %cst {dimension_numbers = #tpu.dot_dimension_numbers<[1], [0], [0], [1], [0, 0, 1, 1], [], []>} : vector<16x32xf32>, vector<32x96xf32>, vector<16x96xf32> -> vector<16x96xf32>
    %3 = vector.extract_strided_slice %2 {offsets = [0, 0], sizes = [16, 32], strides = [1, 1]} : vector<16x96xf32> to vector<16x32xf32>
    %c0_3 = arith.constant 0 : index
    %c0_4 = arith.constant 0 : index
    %4 = vector.load %arg3[%c0_3, %c0_4] : memref<16x32xf32, #tpu.memory_space<vmem>>, vector<16x32xf32>
    tpu.vector_store %arg3[%c0_3, %c0_4], %3 {strides = array<i32>} : memref<16x32xf32, #tpu.memory_space<vmem>>, vector<16x32xf32>,
    %5 = vector.extract_strided_slice %2 {offsets = [0, 32], sizes = [16, 32], strides = [1, 1]} : vector<16x96xf32> to vector<16x32xf32>
    %c0_5 = arith.constant 0 : index
    %c0_6 = arith.constant 0 : index
    %6 = vector.load %arg4[%c0_5, %c0_6] : memref<16x32xf32, #tpu.memory_space<vmem>>, vector<16x32xf32>
    tpu.vector_store %arg4[%c0_5, %c0_6], %5 {strides = array<i32>} : memref<16x32xf32, #tpu.memory_space<vmem>>, vector<16x32xf32>,
    %7 = vector.extract_strided_slice %2 {offsets = [0, 64], sizes = [16, 32], strides = [1, 1]} : vector<16x96xf32> to vector<16x32xf32>
    %c0_7 = arith.constant 0 : index
    %c0_8 = arith.constant 0 : index
    %8 = vector.load %arg5[%c0_7, %c0_8] : memref<16x32xf32, #tpu.memory_space<vmem>>, vector<16x32xf32>
    tpu.vector_store %arg5[%c0_7, %c0_8], %7 {strides = array<i32>} : memref<16x32xf32, #tpu.memory_space<vmem>>, vector<16x32xf32>,
    return
  }
  func.func @transform_0(%arg0: i32) -> (i32, i32) {
    %c0_i32 = arith.constant 0 : i32
    %c0_i32_0 = arith.constant 0 : i32
    return %arg0, %c0_i32 : i32, i32
  }
  func.func @transform_1(%arg0: i32) -> (i32, i32) {
    %c0_i32 = arith.constant 0 : i32
    %c0_i32_0 = arith.constant 0 : i32
    %c0_i32_1 = arith.constant 0 : i32
    return %c0_i32, %c0_i32_0 : i32, i32
  }
  func.func @transform_2(%arg0: i32) -> (i32, i32) {
    %c0_i32 = arith.constant 0 : i32
    %c0_i32_0 = arith.constant 0 : i32
    return %arg0, %c0_i32 : i32, i32
  }
  func.func @transform_3(%arg0: i32) -> (i32, i32) {
    %c0_i32 = arith.constant 0 : i32
    %c0_i32_0 = arith.constant 0 : i32
    return %arg0, %c0_i32 : i32, i32
  }
  func.func @transform_4(%arg0: i32) -> (i32, i32) {
    %c0_i32 = arith.constant 0 : i32
    %c0_i32_0 = arith.constant 0 : i32
    return %arg0, %c0_i32 : i32, i32
  }
}

</mosaic_0001>

<bundles_post_ra>
// kernel: tpu_custom_call.1
= control target key start
LH: loop header
LB: loop body
LE: loop exit
PB: predicated region body
PF: predicated region fallthrough
CT: control target
= control target key end

     0   :  { %10 = vsyncpa [#allocation3], 0  ;;  %s374_s0 = inlined_call_operand.hbm [shape: f32[16,32], index: 0, kind: input, shape index: {}]   ;;  %s375_s1 = inlined_call_operand.hbm [shape: f32[32,96], index: 1, kind: input, shape index: {}]   ;;  %s376_s2 = inlined_call_operand.hbm [shape: f32[16,32], index: 2, kind: output, shape index: {0}]   ;;  %s377_s3 = inlined_call_operand.hbm [shape: f32[16,32], index: 3, kind: output, shape index: {1}]   ;;  %s378_s4 = inlined_call_operand.hbm [shape: f32[16,32], index: 4, kind: output, shape index: {2}]  }
   0x1   :  { %11 = vsyncpa [#allocation6], 0 }
   0x2   :  { %12 = vsyncpa [#allocation4], 0 }
   0x3   :  { %13 = vsyncpa [#allocation9], 0  ;;  %s18_s17 = sshll.u32 %s374_s0, 4  ;;  %s302_s18 = smov [#allocation2]   ;;  %s19_s17 = int_to_ptr.hbm [resolvable:$true] %s18_s17 }
   0x4   :  { %s20_s19 = sshll.u32 %s302_s18, 4  ;;  %s31_s22 = sshll.u32 %s375_s1, 4  ;;  %s21_s19 = int_to_ptr.vmem [resolvable:$true] %s20_s19  ;;  %s32_s22 = int_to_ptr.hbm [resolvable:$true] %s31_s22 }
   0x5   :  { %s303_s23 = smov 128   ;;  %s304_s24 = smov 8  }
   0x6   :  { %26 = dma.hbm_to_vmem [thread:$0]  %s19_s17, 256, %s21_s19, [#allocation3], %s303_s23, %s303_s23, %s304_s24  }
   0x7   :  { %s305_s25 = smov [#allocation5]  }
   0x8   :  { %s33_s26 = sshll.u32 %s305_s25, 4  ;;  %s34_s26 = int_to_ptr.vmem [resolvable:$true] %s33_s26 }
   0x9   :  { %39 = dma.hbm_to_vmem [thread:$0]  %s32_s22, 512, %s34_s26, [#allocation6], %s303_s23, %s303_s23, %s304_s24  }
   0xa   :  { %294 = dma.done.wait [#allocation3], 256  }
   0xb   :  { %295 = vsyncadd [#allocation3], 4294967040 }
   0xc   :  { %296 = dma.done.wait [#allocation6], 512  }
   0xd   :  { %297 = vsyncadd [#allocation6], 4294966784  ;;  %v53_v0 = vld [vmem:[#allocation5 + $0x18] sm:$0xff]  ;;  %v52_v1 = vld [vmem:[#allocation5 + $0x10] sm:$0xff]  ;;  %vm54_vm0 = vcmask 261120   ;;  %s110_s27 = sshll.u32 %s376_s2, 4  ;;  %s111_s27 = int_to_ptr.hbm [resolvable:$true] %s110_s27 }
   0xe   :  { %73 = vmatpush.msra.mxu0 %v53_v0  ;;  %161 = vmatpush.msra.mxu1 %v53_v0  ;;  %v51_v2 = vld [vmem:[#allocation5 + $0x8] sm:$0xff]  ;;  %v50_v3 = vld [vmem:[#allocation5] sm:$0xff]  ;;  %v48_v4 = vld [vmem:[#allocation2] sm:$0xff]  ;;  %s306_s28 = smov [#allocation7]   ;;  %s307_s30 = smov 64  }
   0xf   :  { %v49_v5 = vld [vmem:[#allocation2 + $0x8] sm:$0xff]  ;;  %s108_s29 = sshll.u32 %s306_s28, 4  ;;  %s308_s5 = smov 96   ;;  %s109_s29 = int_to_ptr.vmem [resolvable:$true] %s108_s29 }
  0x10   :  { %74 = vmatpush.msra.mxu0 %v52_v1  ;;  %162 = vmatpush.msra.mxu1 %v52_v1  ;;  %s309_s2 = smov [#allocation8]   ;;  %s123_s9 = sshll.u32 %s377_s3, 4  ;;  %s124_s9 = int_to_ptr.hbm [resolvable:$true] %s123_s9 }
  0x11   :  { %s121_s6 = sshll.u32 %s309_s2, 4  ;;  %s310_s10 = smov [#allocation10]   ;;  %s122_s6 = int_to_ptr.vmem [resolvable:$true] %s121_s6 }
  0x12   :  { %75 = vmatpush.msra.mxu0 %v51_v2  ;;  %163 = vmatpush.msra.mxu1 %v51_v2  ;;  %s134_s11 = sshll.u32 %s310_s10, 4  ;;  %s136_s14 = sshll.u32 %s378_s4, 4  ;;  %s135_s11 = int_to_ptr.vmem [resolvable:$true] %s134_s11  ;;  %s137_s14 = int_to_ptr.hbm [resolvable:$true] %s136_s14 }
  0x14   :  { %76 = vmatpush.msra.mxu0 %v50_v3  ;;  %164 = vmatpush.msra.mxu1 %v50_v3 }
  0x15   :  { %159 = vmatmul.msk.f32.vlgmr.msra.gmra.mxu0 %vm54_vm0, %v48_v4  ;;  %160 = vmatmul.msk.f32.vlgmr.msra.gmra.mxu1 %vm54_vm0, %v49_v5 }
  0x92   :  { %v78_v6 = vpop.f32.mrf.mxu0  ;;  %v81_v7 = vpop.f32.mrf.mxu1 }
  0x93   :  { %84 = vst.msk [vmem:[#allocation7] sm:$0xff] %vm54_vm0, %v78_v6  ;;  %96 = vrot.lane.b32.xlu1 %v78_v6, %s307_s30  ;;  %88 = vrot.lane.b32.xlu0 %v78_v6, %s308_s5 }
  0x94   :  { %85 = vst.msk [vmem:[#allocation7 + $0x8] sm:$0xff] %vm54_vm0, %v81_v7 }
  0x95   :  { %116 = dma.vmem_to_hbm [thread:$0]  %s109_s29, 256, %s111_s27, [#allocation4], %s303_s23, %s303_s23, %s304_s24  }
  0x9b   :  { %98 = vrot.lane.b32.xlu1 %v81_v7, %s307_s30  ;;  %90 = vrot.lane.b32.xlu0 %v81_v7, %s308_s5 }
 0x105   :  { %v97_v8 = vpop.permute.xlu1 %96  ;;  %v89_v9 = vpop.permute.xlu0 %88 }
 0x106   :  { %102 = vst.msk [vmem:[#allocation10] sm:$0xff] %vm54_vm0, %v97_v8 }
 0x107   :  { %94 = vst.msk [vmem:[#allocation8] sm:$0xff] %vm54_vm0, %v89_v9 }
 0x10d   :  { %v99_v10 = vpop.permute.xlu1 %98  ;;  %v91_v11 = vpop.permute.xlu0 %90 }
 0x10e   :  { %103 = vst.msk [vmem:[#allocation10 + $0x8] sm:$0xff] %vm54_vm0, %v99_v10 }
 0x10f   :  { %95 = vst.msk [vmem:[#allocation8 + $0x8] sm:$0xff] %vm54_vm0, %v91_v11 }
 0x110   :  { %129 = dma.vmem_to_hbm [thread:$0]  %s122_s6, 256, %s124_s9, [#allocation9], %s303_s23, %s303_s23, %s304_s24  }
 0x111   :  { %142 = dma.vmem_to_hbm [thread:$0]  %s135_s11, 256, %s137_s14, [#allocation9], %s303_s23, %s303_s23, %s304_s24  }
 0x112   :  { %298 = dma.done.wait [#allocation4], 256  }
 0x113   :  { %299 = vsyncadd [#allocation4], 4294967040 }
 0x114   :  { %300 = dma.done.wait [#allocation9], 512  }
 0x115   :  { %301 = vsyncadd [#allocation9], 4294966784 }
 0x116   :  { %155 = vsyncpa [#allocation3], 1 }
 0x117   :  { %156 = vsyncpa [#allocation6], 1 }
 0x118   :  { %157 = vsyncpa [#allocation4], 1 }
 0x119   :  { %158 = vsyncpa [#allocation9], 1 }

</bundles_post_ra>
